<compile_context>
chip_gen: v6e
topology: v6e:2x2x1
jax: 0.10.0
libtpu: 0.0.40
codegen_flags: <defaults>
</compile_context>

<pallas_src>
import jax
import jax.numpy as jnp
from jax import lax
from jax.experimental import pallas as pl
from jax.experimental.pallas import tpu as pltpu


# QK^T without materializing a transposed K: contract last dim of q with last dim of k.
_QKT_DNUMS = (((1,), (1,)), ((), ()))

_MASK_FILL = -1000000000.0  # matches masked_fill value in the PyTorch module


def _softmax_rows(s):
    """Numerically-stable softmax over the last axis of an f32 [TQ, L] tile."""
    m = jnp.max(s, axis=-1, keepdims=True)
    p = jnp.exp(s - m)
    denom = jnp.sum(p, axis=-1, keepdims=True)
    # EUP approx reciprocal on the tiny (TQ, 1) column + one Newton step to recover
    # full f32 accuracy, then a VPU broadcast-multiply on the big (TQ, L) tile.
    inv = pl.reciprocal(denom, approx=True)
    inv = inv * (2.0 - denom * inv)
    return p * inv


def _make_kernel(has_mask: bool, write_attn: bool):
    """Kernel factory; closures keep the (mask x return_attn) variants in one body."""

    def kernel(*refs):
        if has_mask:
            q_ref, k_ref, v_ref, mask_ref = refs[:4]
            out_refs = refs[4:]
        else:
            q_ref, k_ref, v_ref = refs[:3]
            out_refs = refs[3:]
        if write_attn:
            out_ref, attn_ref = out_refs
        else:
            (out_ref,) = out_refs

        d = q_ref.shape[-1]
        inv_scale = 1.0 / (float(d) ** 0.5)

        # Fold the 1/sqrt(d) scale into the small (TQ, D) q tile, in the input dtype.
        qv = q_ref[...]
        qv = qv * jnp.asarray(inv_scale, dtype=qv.dtype)

        # MXU matmul in the input dtype with f32 accumulation.
        s = lax.dot_general(qv, k_ref[...], dimension_numbers=_QKT_DNUMS,
                            preferred_element_type=jnp.float32)
        if has_mask:
            s = jnp.where(mask_ref[...] == 0, jnp.float32(_MASK_FILL), s)

        attn = _softmax_rows(s)
        attn_lo = attn.astype(v_ref.dtype)      # single cast, reused below
        if write_attn:
            if attn_ref.dtype == attn_lo.dtype:
                attn_ref[...] = attn_lo
            else:
                attn_ref[...] = attn.astype(attn_ref.dtype)

        out = jnp.dot(attn_lo, v_ref[...], preferred_element_type=jnp.float32)
        out_ref[...] = out.astype(out_ref.dtype)

    return kernel


def _vmem_capacity_bytes():
    """Per-core VMEM capacity; conservative fallback (v7x = smallest) if unknown."""
    try:
        info = pltpu.get_tpu_info()
        cap = getattr(info, "vmem_capacity_bytes", None)
        if cap:
            return int(cap)
    except Exception:
        pass
    return 64 << 20


def _vmem_bytes(tq, L, D, in_bytes, attn_bytes, has_mask, write_attn):
    """Approximate per-step VMEM footprint with double-buffered BlockSpec DMAs."""
    kv = 2 * (2 * L * D * in_bytes)                         # K + V buffers
    qo = 2 * (2 * tq * D * in_bytes)                        # q in + out
    at = (2 * tq * L * attn_bytes) if write_attn else 0     # attn writeback block
    mk = (2 * tq * L * 1) if has_mask else 0                # int8 mask block
    tmp = 3 * tq * L * 4                                    # f32 scores/exp + lo copy
    return kv + qo + at + mk + tmp


def _choose_q_tile(L, D, in_bytes, attn_bytes, has_mask, write_attn, vmem_cap):
    """Largest query tile (multiple of 8 dividing L) whose footprint fits the budget."""
    budget = int(vmem_cap * 0.7)
    target = 512 if vmem_cap >= (100 << 20) else 128   # big-VMEM (v5e/v6e) vs v7x-class
    cands = [t for t in range(min(target, L), 0, -8)
             if t % 8 == 0 and L % t == 0]
    if not cands:
        cands = [L]   # fallback: single full-L tile (see TODO at top)
    for t in cands:
        if _vmem_bytes(t, L, D, in_bytes, attn_bytes, has_mask, write_attn) <= budget:
            return t
    return cands[-1]


def scaled_dot_product_attention(q, k, v, mask=None, *, attn_dtype=None,
                                 return_attn=True):
    """q, k, v: [b, nhead, len, dim]. mask (optional, broadcastable to
    [b, nhead, len, len]): 0 => masked. Returns (output, attn) — attn is None when
    return_attn=False."""
    b, h, L, D = q.shape
    BH = b * h

    in_bytes = jnp.dtype(q.dtype).itemsize
    attn_dtype = q.dtype if attn_dtype is None else jnp.dtype(attn_dtype)
    attn_bytes = jnp.dtype(attn_dtype).itemsize
    has_mask = mask is not None

    vmem_cap = _vmem_capacity_bytes()
    TQ = _choose_q_tile(L, D, in_bytes, attn_bytes, has_mask, return_attn, vmem_cap)
    NQ = L // TQ

    need = _vmem_bytes(TQ, L, D, in_bytes, attn_bytes, has_mask, return_attn)
    vmem_limit = min(int(vmem_cap * 0.9),
                     max(need + need // 4 + (4 << 20), 32 << 20))

    # Flatten batch/head (pure metadata reshape) so the grid is 2-D: (bh, q_tile).
    q3 = q.reshape(BH, L, D)
    k3 = k.reshape(BH, L, D)
    v3 = v.reshape(BH, L, D)

    q_spec = pl.BlockSpec((None, TQ, D), lambda bh, qi: (bh, qi, 0))
    kv_spec = pl.BlockSpec((None, L, D), lambda bh, qi: (bh, 0, 0))   # constant over qi
    out_spec = pl.BlockSpec((None, TQ, D), lambda bh, qi: (bh, qi, 0))

    in_specs = [q_spec, kv_spec, kv_spec]
    args = [q3, k3, v3]

    if has_mask:
        # Keep the original (possibly broadcast) batch/head dims — do NOT materialize a
        # [b*h, L, L] mask in HBM.  Only the trailing (query, key) dims are broadcast.
        m = jnp.asarray(mask)
        while m.ndim < 4:
            m = m[None]
        bm, hm = m.shape[0], m.shape[1]
        if bm not in (1, b) or hm not in (1, h):
            m = jnp.broadcast_to(m, (b, h) + m.shape[2:])
            bm, hm = b, h
        m = jnp.broadcast_to(m, (bm, hm, L, L)).astype(jnp.int8)

        def mask_map(bh, qi, _bm=bm, _hm=hm):
            bi = (bh // h) if _bm == b else 0
            hi = (bh % h) if _hm == h else 0
            return (bi, hi, qi, 0)

        in_specs.append(pl.BlockSpec((None, None, TQ, L), mask_map))
        args.append(m)

    if return_attn:
        out_shape = (
            jax.ShapeDtypeStruct((BH, L, D), q.dtype),      # output
            jax.ShapeDtypeStruct((BH, L, L), attn_dtype),   # attn
        )
        out_specs = (out_spec,
                     pl.BlockSpec((None, TQ, L), lambda bh, qi: (bh, qi, 0)))
    else:
        out_shape = jax.ShapeDtypeStruct((BH, L, D), q.dtype)
        out_specs = out_spec

    fn = pl.pallas_call(
        _make_kernel(has_mask, return_attn),
        out_shape=out_shape,
        grid=(BH, NQ),
        in_specs=in_specs,
        out_specs=out_specs,
        compiler_params=pltpu.CompilerParams(
            # "arbitrary" on the inner qi axis keeps the K/V block index constant per
            # core (no re-fetch) when megacore shards the bh axis (v7x).
            dimension_semantics=("parallel", "arbitrary"),
            vmem_limit_bytes=vmem_limit),
    )

    if return_attn:
        out3, attn3 = fn(*args)
        return out3.reshape(b, h, L, D), attn3.reshape(b, h, L, L)
    out3 = fn(*args)
    return out3.reshape(b, h, L, D), None


def _reference(q, k, v, mask=None):
    d = q.shape[-1]
    scale = d ** 0.5
    attn = jnp.matmul(q / scale, jnp.swapaxes(k, 2, 3))
    if mask is not None:
        attn = jnp.where(mask == 0, _MASK_FILL, attn)
    attn = jax.nn.softmax(attn, axis=-1)
    out = jnp.matmul(attn, v)
    return out, attn


if __name__ == "__main__":
    key = jax.random.PRNGKey(0)
    b, nhead, seq, dim = 2, 4, 8, 32

    kq, kk, kv = jax.random.split(key, 3)
    q = jax.random.normal(kq, (b, nhead, seq, dim), dtype=jnp.float32)
    k = jax.random.normal(kk, (b, nhead, seq, dim), dtype=jnp.float32)
    v = jax.random.normal(kv, (b, nhead, seq, dim), dtype=jnp.float32)

    # Unmasked path.
    out, attn = scaled_dot_product_attention(q, k, v)
    jax.block_until_ready(out)
    jax.block_until_ready(attn)
    out_ref, attn_ref = _reference(q, k, v)
    assert jnp.allclose(out, out_ref, atol=1e-5, rtol=1e-5)
    assert jnp.allclose(attn, attn_ref, atol=1e-5, rtol=1e-5)

    # Masked path (lower-triangular mask broadcast over batch/head; 0 => masked).
    mask = jnp.tril(jnp.ones((seq, seq), dtype=jnp.int32))[None, None]  # [1,1,L,L]
    out_m, attn_m = scaled_dot_product_attention(q, k, v, mask=mask)
    jax.block_until_ready(out_m)
    out_m_ref, attn_m_ref = _reference(q, k, v, mask=mask)
    assert jnp.allclose(out_m, out_m_ref, atol=1e-5, rtol=1e-5)
    assert jnp.allclose(attn_m, attn_m_ref, atol=1e-5, rtol=1e-5)

    # Output-only path (skips the (L, L) attn writeback — dominant HBM stream).
    out_only, none_attn = scaled_dot_product_attention(q, k, v, return_attn=False)
    jax.block_until_ready(out_only)
    assert none_attn is None
    assert jnp.allclose(out_only, out_ref, atol=1e-5, rtol=1e-5)

    print("KERNEL_OK")
</pallas_src>

<mosaic_0001>
module attributes {stable_mosaic.version = 11 : i64} {
  func.func @kernel(%arg0: i32, %arg1: i32, %arg2: memref<1x8x32xf32, #tpu.memory_space<vmem>>, %arg3: memref<1x8x32xf32, #tpu.memory_space<vmem>>, %arg4: memref<1x8x32xf32, #tpu.memory_space<vmem>>, %arg5: memref<1x8x32xf32, #tpu.memory_space<vmem>>, %arg6: memref<1x8x8xf32, #tpu.memory_space<vmem>>) attributes {dimension_semantics = [#tpu.dimension_semantics<parallel>, #tpu.dimension_semantics<arbitrary>], iteration_bounds = array<i64: 8, 1>, scalar_prefetch = 0 : i64, scratch_operands = 0 : i64, tpu.core_type = #tpu.core_type<tc>, window_params = [{transform_indices = @transform_0, window_bounds = array<i64: 1, 8, 32>}, {transform_indices = @transform_1, window_bounds = array<i64: 1, 8, 32>}, {transform_indices = @transform_2, window_bounds = array<i64: 1, 8, 32>}, {transform_indices = @transform_3, window_bounds = array<i64: 1, 8, 32>}, {transform_indices = @transform_4, window_bounds = array<i64: 1, 8, 8>}]} {
    %c0 = arith.constant 0 : index
    %c0_0 = arith.constant 0 : index
    %c0_1 = arith.constant 0 : index
    %0 = vector.load %arg2[%c0, %c0_0, %c0_1] : memref<1x8x32xf32, #tpu.memory_space<vmem>>, vector<1x8x32xf32>
    %1 = vector.shape_cast %0 : vector<1x8x32xf32> to vector<8x32xf32>
    %cst = arith.constant 0.176776692 : f32
    %2 = vector.broadcast %cst : f32 to vector<8x32xf32>
    %3 = arith.mulf %1, %2 : vector<8x32xf32>
    %c0_2 = arith.constant 0 : index
    %c0_3 = arith.constant 0 : index
    %c0_4 = arith.constant 0 : index
    %4 = vector.load %arg3[%c0_2, %c0_3, %c0_4] : memref<1x8x32xf32, #tpu.memory_space<vmem>>, vector<1x8x32xf32>
    %5 = vector.shape_cast %4 : vector<1x8x32xf32> to vector<8x32xf32>
    %cst_5 = arith.constant dense<0.000000e+00> : vector<8x8xf32>
    %6 = tpu.matmul %3, %5, %cst_5 {dimension_numbers = #tpu.dot_dimension_numbers<[1], [1], [0], [0], [0, 0, 1, 0], [], []>} : vector<8x32xf32>, vector<8x32xf32>, vector<8x8xf32> -> vector<8x8xf32>
    %cst_6 = arith.constant dense<0xFF800000> : vector<8xf32>
    %7 = vector.multi_reduction <maximumf>, %6, %cst_6 [1] : vector<8x8xf32> to vector<8xf32>
    %8 = vector.shape_cast %7 : vector<8xf32> to vector<8x1xf32>
    %9 = vector.broadcast %8 : vector<8x1xf32> to vector<8x8xf32>
    %10 = arith.subf %6, %9 : vector<8x8xf32>
    %11 = math.exp %10 : vector<8x8xf32>
    %cst_7 = arith.constant dense<0.000000e+00> : vector<8xf32>
    %12 = vector.multi_reduction <add>, %11, %cst_7 [1] : vector<8x8xf32> to vector<8xf32>
    %13 = vector.shape_cast %12 : vector<8xf32> to vector<8x1xf32>
    %14 = tpu.reciprocal %13 {approx = true} : vector<8x1xf32> -> vector<8x1xf32>
    %15 = arith.mulf %13, %14 : vector<8x1xf32>
    %cst_8 = arith.constant 2.000000e+00 : f32
    %16 = vector.broadcast %cst_8 : f32 to vector<8x1xf32>
    %17 = arith.subf %16, %15 : vector<8x1xf32>
    %18 = arith.mulf %14, %17 : vector<8x1xf32>
    %19 = vector.broadcast %18 : vector<8x1xf32> to vector<8x8xf32>
    %20 = arith.mulf %11, %19 : vector<8x8xf32>
    %c0_9 = arith.constant 0 : index
    %c0_10 = arith.constant 0 : index
    %c0_11 = arith.constant 0 : index
    %21 = vector.load %arg6[%c0_9, %c0_10, %c0_11] : memref<1x8x8xf32, #tpu.memory_space<vmem>>, vector<1x8x8xf32>
    %22 = vector.shape_cast %21 : vector<1x8x8xf32> to vector<8x8xf32>
    %23 = vector.shape_cast %20 : vector<8x8xf32> to vector<1x8x8xf32>
    tpu.vector_store %arg6[%c0_9, %c0_10, %c0_11], %23 {strides = array<i32>} : memref<1x8x8xf32, #tpu.memory_space<vmem>>, vector<1x8x8xf32>,
    %c0_12 = arith.constant 0 : index
    %c0_13 = arith.constant 0 : index
    %c0_14 = arith.constant 0 : index
    %24 = vector.load %arg4[%c0_12, %c0_13, %c0_14] : memref<1x8x32xf32, #tpu.memory_space<vmem>>, vector<1x8x32xf32>
    %25 = vector.shape_cast %24 : vector<1x8x32xf32> to vector<8x32xf32>
    %cst_15 = arith.constant dense<0.000000e+00> : vector<8x32xf32>
    %26 = tpu.matmul %20, %25, %cst_15 {dimension_numbers = #tpu.dot_dimension_numbers<[1], [0], [0], [1], [0, 0, 1, 1], [], []>} : vector<8x8xf32>, vector<8x32xf32>, vector<8x32xf32> -> vector<8x32xf32>
    %c0_16 = arith.constant 0 : index
    %c0_17 = arith.constant 0 : index
    %c0_18 = arith.constant 0 : index
    %27 = vector.load %arg5[%c0_16, %c0_17, %c0_18] : memref<1x8x32xf32, #tpu.memory_space<vmem>>, vector<1x8x32xf32>
    %28 = vector.shape_cast %27 : vector<1x8x32xf32> to vector<8x32xf32>
    %29 = vector.shape_cast %26 : vector<8x32xf32> to vector<1x8x32xf32>
    tpu.vector_store %arg5[%c0_16, %c0_17, %c0_18], %29 {strides = array<i32>} : memref<1x8x32xf32, #tpu.memory_space<vmem>>, vector<1x8x32xf32>,
    return
  }
  func.func @transform_0(%arg0: i32, %arg1: i32) -> (i32, i32, i32) {
    %c0_i32 = arith.constant 0 : i32
    %c0_i32_0 = arith.constant 0 : i32
    return %arg0, %arg1, %c0_i32 : i32, i32, i32
  }
  func.func @transform_1(%arg0: i32, %arg1: i32) -> (i32, i32, i32) {
    %c0_i32 = arith.constant 0 : i32
    %c0_i32_0 = arith.constant 0 : i32
    %c0_i32_1 = arith.constant 0 : i32
    return %arg0, %c0_i32, %c0_i32_0 : i32, i32, i32
  }
  func.func @transform_2(%arg0: i32, %arg1: i32) -> (i32, i32, i32) {
    %c0_i32 = arith.constant 0 : i32
    %c0_i32_0 = arith.constant 0 : i32
    %c0_i32_1 = arith.constant 0 : i32
    return %arg0, %c0_i32, %c0_i32_0 : i32, i32, i32
  }
  func.func @transform_3(%arg0: i32, %arg1: i32) -> (i32, i32, i32) {
    %c0_i32 = arith.constant 0 : i32
    %c0_i32_0 = arith.constant 0 : i32
    return %arg0, %arg1, %c0_i32 : i32, i32, i32
  }
  func.func @transform_4(%arg0: i32, %arg1: i32) -> (i32, i32, i32) {
    %c0_i32 = arith.constant 0 : i32
    %c0_i32_0 = arith.constant 0 : i32
    return %arg0, %arg1, %c0_i32 : i32, i32, i32
  }
}

</mosaic_0001>

<bundles_post_ra>
// kernel: tpu_custom_call.1
= control target key start
LH: loop header
LB: loop body
LE: loop exit
PB: predicated region body
PF: predicated region fallthrough
CT: control target
= control target key end

     0   :  { %s1265_s0 = inlined_call_operand.hbm [shape: f32[8,8,32], index: 0, kind: input, shape index: {}]   ;;  %s1266_s1 = inlined_call_operand.hbm [shape: f32[8,8,32], index: 1, kind: input, shape index: {}]   ;;  %s1267_s2 = inlined_call_operand.hbm [shape: f32[8,8,32], index: 2, kind: input, shape index: {}]   ;;  %s1268_s3 = inlined_call_operand.hbm [shape: f32[8,8,32], index: 3, kind: output, shape index: {0}]   ;;  %s1269_s4 = inlined_call_operand.hbm [shape: f32[8,8,8], index: 4, kind: output, shape index: {1}]  }
   0x1   :  { %1273 = sst [smem:[#allocation18_spill]] %s1266_s1 }
   0x2   :  { %10 = vsyncpa [#allocation3], 0 }
   0x3   :  { %12 = vsyncpa [#allocation3 + $0x1], 0 }
   0x4   :  { %13 = vsyncpa [#allocation6], 0 }
   0x5   :  { %15 = vsyncpa [#allocation6 + $0x1], 0 }
   0x6   :  { %16 = vsyncpa [#allocation4], 0 }
   0x7   :  { %18 = vsyncpa [#allocation4 + $0x1], 0 }
   0x8   :  { %19 = vsyncpa [#allocation10], 0 }
   0x9   :  { %21 = vsyncpa [#allocation10 + $0x1], 0  ;;  %s1029_s15 = smov 0   ;;  %s1031_s16 = smov 0  }
   0xa   :  { %s1033_s17 = smov 0   ;;  %s1035_s18 = smov 0  }
   0xb   :  { %s1037_s19 = smov 0   ;;  %s1039_s20 = smov 0  }
   0xc LB: > { %1274 = sst [smem:[#allocation15_spill]] %s991_s19  ;;  %s1060_s21 = sadd.s32 4294967295, %s995_s20   ;;  %s995_s20 = sphi %s1039_s20, %s27_s20   ;;  %s991_s19 = sphi %s1037_s19, %s1287_s19   ;;  %s987_s18 = sphi %s1035_s18, %s1286_s18   ;;  %s983_s17 = sphi %s1033_s17, %s1290_s17   ;;  %s979_s16 = sphi %s1031_s16, %s1289_s16   ;;  %s975_s15 = sphi %s1029_s15, %s1288_s15  }
   0xd   : > { %s676_s22 = sadd.s32 4294967294, %s995_s20   ;;  %s39_s23 = sadd.s32 1, %s991_s19 }
   0xe   : > { %s48_s24 = sadd.s32 1, %s983_s17  ;;  %p41_p0 = scmp.ge.s32.totalorder %s39_s23, 8 }
   0xf   : > { %p55_p1 = scmp.ne.s32.totalorder %s983_s17, %s979_s16  ;;  %p56_p2 = scmp.eq.s32.totalorder %s995_s20, 0 }
  0x10   : > { %p61_p3 = scmp.ne.s32.totalorder %s979_s16, %s975_s15  ;;  %s1292_s23 = smov (%p41_p0, %s39_s23), 0 }
  0x11   : > { %1275 = sst [smem:[#allocation16_spill]] %s1292_s23  ;;  %p1072_p4 = por %p56_p2, %p55_p1 }
  0x12   : > { %p62_p5 = scmp.eq.s32.totalorder %s1060_s21, 0  ;;  %s43_s26 = ssub.s32 %s991_s19, %s1292_s23 }
  0x13   : > { %p139_p6 = scmp.eq.s32.totalorder %s1060_s21, 7  ;;  %p46_p7 = scmp.eq.s32.totalorder %s43_s26, 0 }
  0x14   : > { %p1080_p8 = por %p62_p5, %p61_p3  ;;  %p145_p10 = scmp.eq.s32.totalorder %s676_s22, 7 }
  0x15   : > { %p1084_p9 = por %p139_p6, %p55_p1  ;;  %p741_p12 = scmp.lt.s32.totalorder %s995_s20, 8 }
  0x16   : > { %s1089_s29 = scalar_select %p46_p7, %s983_s17, %s48_s24  }
  0x17   : > { %p1091_p11 = por %p145_p10, %p61_p3  ;;  %s1270_s5 = sand.u32 1, %s983_s17  }
  0x18   : > { %1279 = sst [smem:[#allocation17_spill]] %s1089_s29  ;;  %s1099_s6 = sshll.u32 %s1270_s5, 3 }
  0x19   : > { %s1102_s7 = sshll.u32 %s991_s19, 7  ;;  %p1106_p13 = pnand %p741_p12, %p1072_p4 }
  0x1a   : > { %s212_s9 = sand.u32 1, %s995_s20   ;;  %s1282_s1 = sld [smem:[#allocation18_spill]] }
  0x1b   : > { %s216_s13 = scalar_lea.vmem [#allocation5], %s1099_s6  ;;  %p685_p0 = scmp.ge.s32.totalorder %s995_s20, 1 }
  0x1c   : > { %s223_s14 = sshll.u32 %s216_s13, 4  ;;  %p246_p1 = scmp.lt.s32.totalorder %s995_s20, 9  ;;  %s224_s14 = int_to_ptr.vmem [resolvable:$true] %s223_s14 }
  0x1d   : > { %s1118_s22 = scalar_lea.sflag [#allocation6], %s212_s9  ;;  %p799_p2 = pneg %p1106_p13 }
  0x1e   : > { %s810_s24 = scalar_lea.vmem %s224_s14, 128  ;;  %s997_s25 = smov [#allocation5]  }
  0x1f   : > { %p811_p3 = scmp.ne.s32.totalorder %s224_s14, %s810_s24  ;;  %s815_s26 = sshll.u32 %s997_s25, 4  ;;  %s816_s26 = int_to_ptr.vmem [resolvable:$false] %s815_s26 }
  0x20   : > { %s221_s12 = scalar_lea.hbm %s1282_s1, %s1102_s7  ;;  %s817_s10 = scalar_lea.vmem %s816_s26, 256 }
  0x21   : > { %p813_p4 = pnand %p811_p3, %p799_p2  ;;  %p818_p6 = scmp.lt.s32.totalorder %s224_s14, %s816_s26 }
  0x22   : > { %p819_p7 = scmp.lt.s32.totalorder %s817_s10, %s810_s24 }
  0x23   : > { %p814_p5 = pneg %p813_p4 }
  0x24   : > { %p820_p10 = por %p819_p7, %p818_p6 }
  0x26   : > { %p821_p12 = pnand %p820_p10, %p814_p5 }
  0x28   : > { %824 = shalt.err (!%p821_p12)
}
  0x29   : > { %730 = dma.hbm_to_vmem [thread:$0]  (!%p1106_p13), %s221_s12, 128, %s224_s14, %s1118_s22  }
  0x2a   : > { %p1132_p3 = pnand %p685_p0, %p246_p1  ;;  %s203_s24 = scalar_lea.hbm %s1265_s0, %s1102_s7 }
  0x2b   : > { %s197_s25 = scalar_lea.vmem [#allocation2], %s1099_s6  ;;  %s239_s1 = scalar_lea.hbm %s1267_s2, %s1102_s7 }
  0x2c   : > { %s205_s26 = sshll.u32 %s197_s25, 4  ;;  %s1284_s23 = sand.u32 1, %s983_s17   ;;  %s206_s26 = int_to_ptr.vmem [resolvable:$true] %s205_s26 }
  0x2d   : > { %s194_s19 = scalar_lea.sflag [#allocation3], %s1284_s23  ;;  %s838_s12 = scalar_lea.vmem %s206_s26, 128 }
  0x2e   : > { %p839_p4 = scmp.ne.s32.totalorder %s206_s26, %s838_s12  ;;  %s998_s14 = smov [#allocation2]  }
  0x2f   : > { %s843_s29 = sshll.u32 %s998_s14, 4  ;;  %s844_s29 = int_to_ptr.vmem [resolvable:$false] %s843_s29 }
  0x30   : > { %p841_p0 = pnand %p839_p4, %p799_p2  ;;  %s845_s11 = scalar_lea.vmem %s844_s29, 256 }
  0x31   : > { %p846_p5 = scmp.lt.s32.totalorder %s206_s26, %s844_s29  ;;  %p847_p6 = scmp.lt.s32.totalorder %s845_s11, %s838_s12 }
  0x32   : > { %p842_p1 = pneg %p841_p0 }
  0x33   : > { %p848_p7 = por %p847_p6, %p846_p5 }
  0x35   : > { %p849_p10 = pnand %p848_p7, %p842_p1 }
  0x37   : > { %852 = shalt.err (!%p849_p10)
}
  0x38   : > { %727 = dma.hbm_to_vmem [thread:$0]  (!%p1106_p13), %s203_s24, 128, %s206_s26, %s194_s19  }
  0x39   : > { %s234_s23 = scalar_lea.vmem [#allocation7], %s1099_s6  ;;  %s999_s25 = smov [#allocation7]  }
  0x3a   : > { %s241_s5 = sshll.u32 %s234_s23, 4  ;;  %s871_s29 = sshll.u32 %s999_s25, 4  ;;  %s242_s5 = int_to_ptr.vmem [resolvable:$true] %s241_s5  ;;  %s872_s29 = int_to_ptr.vmem [resolvable:$false] %s871_s29 }
  0x3b   : > { %s866_s13 = scalar_lea.vmem %s242_s5, 128  ;;  %s873_s10 = scalar_lea.vmem %s872_s29, 256 }
  0x3c   : > { %p867_p12 = scmp.ne.s32.totalorder %s242_s5, %s866_s13  ;;  %p874_p1 = scmp.lt.s32.totalorder %s242_s5, %s872_s29 }
  0x3d   : > { %p875_p5 = scmp.lt.s32.totalorder %s873_s10, %s866_s13 }
  0x3e   : > { %p869_p4 = pnand %p867_p12, %p799_p2 }
  0x3f   : > { %p876_p6 = por %p875_p5, %p874_p1 }
  0x40   : > { %p870_p0 = pneg %p869_p4 }
  0x42   : > { %p877_p7 = pnand %p876_p6, %p870_p0 }
  0x44   : > { %880 = shalt.err (!%p877_p7)
}
  0x45   : > { %733 = dma.hbm_to_vmem [thread:$0]  (!%p1106_p13), %s239_s1, 128, %s242_s5, %s1118_s22  }
  0x46   : > { %250 = sbr.rel (%p1132_p3) target bundleno = 803 (0x323), region = 32  ;;  %s1167_s24 = sand.u32 (!%p1132_p3), 1, %s979_s16  }
  0x47   : > { %s1170_s26 = sshll.u32 (!%p1132_p3), %s1167_s24, 3  ;;  %s253_s8 = scalar_lea.sflag (!%p1132_p3), [#allocation3], %s1167_s24 }
  0x48   : > { %s256_s12 = scalar_lea.vmem (!%p1132_p3), [#allocation2], %s1170_s26 }
  0x4b   : > { %958 = dma.done.wait (%p1080_p8), %s253_s8, 128  }
  0x4c   : > { %960 = vsyncadd (%p1080_p8), %s253_s8, 4294967168  ;;  %s261_s1 = sand.u32 1, %s1060_s21   ;;  %s265_s22 = scalar_lea.vmem [#allocation5], %s1170_s26 }
  0x4d   : > { %s262_s7 = scalar_lea.sflag [#allocation6], %s261_s1 }
  0x4e   : > { %962 = dma.done.wait (%p1080_p8), %s262_s7, 256  }
  0x4f   : > { %964 = vsyncadd (%p1080_p8), %s262_s7, 4294967040  ;;  %v1000_v0 = vmov 0.0   ;;  %vm1001_vm0 = vmmov 0   ;;  %vm317_vm1 = vcmask 261120   ;;  %v316_v1 = vld [vmem:[%s265_s22] sm:$0xff]  ;;  %v314_v2 = vld [vmem:[%s256_s12] sm:$0xff] }
  0x50   : > { %704 = vmatprep.subr.mxu0 %v1000_v0  ;;  %706 = vmatprep.mubr.msk.f32.mxu0 %vm1001_vm0, %v1000_v0  ;;  %v315_v3 = vmul.f32 0.17677669, %v314_v2  ;;  %vm394_vm2 = vcmask 64512   ;;  %s274_s21 = scalar_lea.vmem [#allocation7], %s1170_s26  ;;  %s313_s27 = scalar_lea.vmem [#allocation9], %s1170_s26 }
  0x51   : > { %709 = vmatprep.subr.mxu1 %v1000_v0  ;;  %711 = vmatprep.mubr.msk.f32.mxu1 %vm1001_vm0, %v1000_v0  ;;  %v410_v12 = vld [vmem:[%s274_s21] sm:$0xff]  ;;  %s696_s9 = sshll.u32 %s987_s18, 7  ;;  %s519_s5 = sshll.u32 %s313_s27, 4  ;;  %s520_s5 = int_to_ptr.vmem [resolvable:$true] %s519_s5 }
  0x52   : > { %705 = vmatpush3.xpose.msk.msra.mxu0 %vm317_vm1, %v316_v1  ;;  %710 = vmatpush3.msra.mxu1 %v410_v12  ;;  %s517_s23 = scalar_lea.hbm %s1269_s4, %s696_s9  ;;  %s491_s13 = scalar_lea.sflag [#allocation10], %s1167_s24 }
  0x53   : > { %s881_s25 = scalar_lea.vmem %s520_s5, 128  ;;  %s1002_s29 = smov [#allocation9]  }
  0x54   : > { %p882_p8 = scmp.ne.s32.totalorder %s520_s5, %s881_s25  ;;  %s885_s10 = sshll.u32 %s1002_s29, 4  ;;  %s886_s10 = int_to_ptr.vmem [resolvable:$false] %s885_s10 }
  0x55   : > { %707 = vmatmul.mubr.msk.f32.vlgmr.msra.gmra.mxu0 %vm317_vm1, %v315_v3  ;;  %s887_s19 = scalar_lea.vmem %s886_s10, 256  ;;  %p888_p3 = scmp.lt.s32.totalorder %s520_s5, %s886_s10 }
  0x56   : > { %p883_p13 = pnand %p882_p8, %p1084_p9  ;;  %p889_p10 = scmp.lt.s32.totalorder %s887_s19, %s881_s25 }
  0x58   : > { %p884_p2 = pneg %p883_p13  ;;  %p890_p12 = por %p889_p10, %p888_p3 }
  0x5a   : > { %p891_p4 = pnand %p890_p12, %p884_p2 }
 0x115   : > { %v390_v4 = vpop.f32.mrf.mxu0 }
 0x116   : > { %v395_v5 = vsel %vm394_vm2, %v390_v4, -inf }
 0x117   : > { %396 = vmax.xlane.f32.xlu0 %v395_v5  ;;  %v708_v6 = vpop.f32.mrf.mxu0 }
 0x1a0   : > { %v397_v7 = vpop.xlane.xlu0 %396 }
 0x1a1   : > { %v398_v8 = vsub.f32 %v390_v4, %v397_v7 }
 0x1a3   : > { %v399_v9 = vmul.f32 1.442695, %v398_v8 }
 0x1a5   : > { %793 = vpow2.f32 %v399_v9 }
 0x1b2   : > { %v794_v10 = vpop.eup %793 }
 0x1b3   : > { %v401_v11 = vsel %vm394_vm2, %v794_v10, 0.0 }
 0x1b4   : > { %402 = vadd.xlane.f32.xlu0 %v401_v11 }
 0x23d   : > { %v403_v13 = vpop.xlane.xlu0 %402 }
 0x23e   : > { %795 = vrcp.f32 %v403_v13 }
 0x24b   : > { %v796_v14 = vpop.eup %795 }
 0x24c   : > { %v405_v15 = vmul.f32 %v796_v14, %v403_v13 }
 0x24e   : > { %v406_v16 = vsub.f32 2.0, %v405_v15 }
 0x250   : > { %v407_v17 = vmul.f32 %v796_v14, %v406_v16 }
 0x252   : > { %v408_v18 = vmul.f32 %v794_v10, %v407_v17 }
 0x254   : > { %712 = vmatmul.mubr.msk.f32.vlgmr.msra.gmra.mxu1 %vm394_vm2, %v408_v18  ;;  %409 = vst.msk [vmem:[%s313_s27] sm:$0xff] %vm394_vm2, %v408_v18 }
 0x255   : > { %894 = shalt.err (!%p891_p4)
}
 0x256   : > { %s895_s6 = scalar_lea.hbm %s517_s23, 128  ;;  %s899_s1 = scalar_lea.hbm %s1269_s4, 1024 }
 0x257   : > { %p896_p0 = scmp.ne.s32.totalorder %s517_s23, %s895_s6  ;;  %p900_p6 = scmp.lt.s32.totalorder %s517_s23, %s1269_s4 }
 0x258   : > { %p901_p7 = scmp.lt.s32.totalorder %s899_s1, %s895_s6 }
 0x259   : > { %p897_p1 = pnand %p896_p0, %p1084_p9 }
 0x25a   : > { %p902_p8 = por %p901_p7, %p900_p6 }
 0x25b   : > { %p898_p5 = pneg %p897_p1 }
 0x25d   : > { %p903_p13 = pnand %p902_p8, %p898_p5 }
 0x25f   : > { %906 = shalt.err (!%p903_p13)
}
 0x260   : > { %721 = dma.vmem_to_hbm [thread:$0]  (%p1084_p9), %s520_s5, 128, %s517_s23, %s491_s13  }
 0x261   : > { %s306_s21 = scalar_lea.vmem [#allocation8], %s1170_s26  ;;  %s1217_s25 = scalar_lea.hbm %s1268_s3, %s696_s9 }
 0x262   : > { %s505_s27 = sshll.u32 %s306_s21, 4  ;;  %s486_s29 = scalar_lea.sflag [#allocation4], %s1167_s24  ;;  %s1219_s27 = int_to_ptr.vmem [resolvable:$true] %s505_s27 }
 0x263   : > { %s907_s10 = scalar_lea.vmem %s1219_s27, 128  ;;  %s1003_s18 = smov [#allocation8]  }
 0x264   : > { %p908_p2 = scmp.ne.s32.totalorder %s1219_s27, %s907_s10  ;;  %s911_s26 = sshll.u32 %s1003_s18, 4  ;;  %s912_s26 = int_to_ptr.vmem [resolvable:$false] %s911_s26 }
 0x265   : > { %s913_s9 = scalar_lea.vmem %s912_s26, 256  ;;  %p914_p12 = scmp.lt.s32.totalorder %s1219_s27, %s912_s26 }
 0x266   : > { %p909_p3 = pnand %p908_p2, %p1084_p9  ;;  %p915_p4 = scmp.lt.s32.totalorder %s913_s9, %s907_s10 }
 0x268   : > { %p910_p10 = pneg %p909_p3  ;;  %p916_p0 = por %p915_p4, %p914_p12 }
 0x26a   : > { %p917_p1 = pnand %p916_p0, %p910_p10 }
 0x314   : > { %v480_v19 = vpop.f32.mrf.mxu1 }
 0x315   : > { %484 = vst.msk [vmem:[%s306_s21] sm:$0xff] %vm317_vm1, %v480_v19 }
 0x316   : > { %v713_v20 = vpop.f32.mrf.mxu1 }
 0x317   : > { %920 = shalt.err (!%p917_p1)
}
 0x318   : > { %s921_s23 = scalar_lea.hbm %s1217_s25, 128  ;;  %s925_s13 = scalar_lea.hbm %s1268_s3, 1024 }
 0x319   : > { %p922_p5 = scmp.ne.s32.totalorder %s1217_s25, %s921_s23  ;;  %p926_p8 = scmp.lt.s32.totalorder %s1217_s25, %s1268_s3 }
 0x31a   : > { %p927_p13 = scmp.lt.s32.totalorder %s925_s13, %s921_s23 }
 0x31b   : > { %p923_p6 = pnand %p922_p5, %p1084_p9 }
 0x31c   : > { %p928_p2 = por %p927_p13, %p926_p8 }
 0x31d   : > { %p924_p7 = pneg %p923_p6 }
 0x31f   : > { %p929_p3 = pnand %p928_p2, %p924_p7 }
 0x321   : > { %932 = shalt.err (!%p929_p3)
}
 0x322   : > { %720 = dma.vmem_to_hbm [thread:$0]  (%p1084_p9), %s1219_s27, 128, %s1217_s25, %s486_s29  }
 0x323 PF: > { %p742_p10 = scmp.ge.s32.totalorder %s995_s20, 2  ;;  %s531_s8 = sand.u32 1, %s975_s15  }
 0x324   : > { %s532_s12 = scalar_lea.sflag [#allocation4], %s531_s8 }
 0x325   : > { %p735_p12 = pnand %p742_p10, %p1091_p11 }
 0x327   : > { %p736_p4 = pneg %p735_p12 }
 0x329   : > { %966 = dma.done.wait (%p736_p4), %s532_s12, 128  }
 0x32a   : > { %968 = vsyncadd (%p736_p4), %s532_s12, 4294967168  ;;  %s541_s1 = scalar_lea.sflag [#allocation10], %s531_s8 }
 0x32b   : > { %970 = dma.done.wait (%p736_p4), %s541_s1, 128  }
 0x32c   : > { %972 = vsyncadd (%p736_p4), %s541_s1, 4294967168  ;;  %s27_s20 = sadd.s32 1, %s995_s20   ;;  %s1285_s28 = sld [smem:[#allocation17_spill]] }
 0x32d   : > { %p24_p0 = scmp.ge.s32.totalorder %s27_s20, 10   ;;  %s1286_s18 = sld [smem:[#allocation15_spill]] }
 0x32e   : > { %s1287_s19 = sld [smem:[#allocation16_spill]]  ;;  %s1288_s15 = smov %s979_s16 }
 0x32f   : > { %s1289_s16 = smov %s983_s17  ;;  %26 = sbr.rel (!%p24_p0) target bundleno = 12 (0xc), region = 118 }
 0x332   : > { %s1290_s17 = smov %s1285_s28 }
 0x334   :  { %546 = vsyncpa [#allocation3], 1 }
 0x335   :  { %548 = vsyncpa [#allocation3 + $0x1], 1 }
 0x336   :  { %549 = vsyncpa [#allocation6], 1 }
 0x337   :  { %551 = vsyncpa [#allocation6 + $0x1], 1 }
 0x338   :  { %552 = vsyncpa [#allocation4], 1 }
 0x339   :  { %554 = vsyncpa [#allocation4 + $0x1], 1 }
 0x33a   :  { %555 = vsyncpa [#allocation10], 1 }
 0x33b   :  { %557 = vsyncpa [#allocation10 + $0x1], 1 }

</bundles_post_ra>
